<compile_context>
chip_gen: v7x
topology: tpu7x:2x2x1
jax: 0.10.0
libtpu: 0.0.40
codegen_flags: <defaults>
</compile_context>

<pallas_src>
import functools

import jax
import jax.numpy as jnp
from jax import lax
from jax.experimental import pallas as pl
from jax.experimental.pallas import tpu as pltpu

_CLAMP_MIN = 1e-8
_DEFAULT_BLOCK_BYTES = 2 * 1024 * 1024   # ~2 MiB per input array per block
_VMEM_LIMIT_BYTES = 32 * 1024 * 1024     # safe on v5e/v6e/v7x for <=4 streams x 2 bufs x 2-4 MiB


# ---------------------------------------------------------------------------
# Kernels
# ---------------------------------------------------------------------------
def _survode_elem_kernel(lam_ref, Lam_ref, lab_ref, out_ref):
    """Elementwise loss: -labels * log(max(lambda, 1e-8)) + Lambda."""
    lam = jnp.maximum(lam_ref[...].astype(jnp.float32), _CLAMP_MIN)
    lab = lab_ref[...].astype(jnp.float32)
    Lam = Lam_ref[...].astype(jnp.float32)
    out_ref[...] = -lab * jnp.log(lam) + Lam


def _make_partial_kernel(tb, B, fold, need_mask):
    """Per-block partial sums.

    Each grid step reduces its (tb, T) loss block to a lane-dense partial:
      fold=True : (8, T)  -- sum groups of 8 sublane rows (VPU adds across vregs)
      fold=False: (1, T)  -- tb == B < 8, single block, one sublane reduce
    Tail rows beyond B are masked to zero (select, so NaN-safe).
    """

    def kernel(lam_ref, Lam_ref, lab_ref, out_ref):
        i = pl.program_id(0)
        lam = jnp.maximum(lam_ref[...].astype(jnp.float32), _CLAMP_MIN)
        lab = lab_ref[...].astype(jnp.float32)
        Lam = Lam_ref[...].astype(jnp.float32)
        loss = -lab * jnp.log(lam) + Lam
        T = loss.shape[1]
        if need_mask:
            row = i * tb + lax.broadcasted_iota(jnp.int32, loss.shape, 0)
            loss = jnp.where(row < B, loss, jnp.float32(0.0))
        if fold:
            out_ref[...] = jnp.sum(loss.reshape(tb // 8, 8, T), axis=0)
        else:
            out_ref[...] = jnp.sum(loss, axis=0, keepdims=True)

    return kernel


# ---------------------------------------------------------------------------
# Wrapper
# ---------------------------------------------------------------------------
def _choose_row_tile(B, T, block_bytes):
    """Pick a row-tile: multiple of 8 when possible, ~block_bytes per array."""
    target_rows = max(8, block_bytes // (4 * T))
    tb = min(int(target_rows), B)
    tb = (tb // 8) * 8
    if tb >= 8:
        return tb, True          # fold groups of 8 sublane rows
    return B, False              # B < 8: single full-dim block


@functools.partial(jax.jit, static_argnames=("reduction", "block_bytes"))
def survode_loss(lam, Lam, labels, reduction="mean", block_bytes=_DEFAULT_BLOCK_BYTES):
    """Pallas implementation of SurvODEloss.forward.

    Args:
      lam:    outputs['lambda'],  shape [B, T] float32
      Lam:    outputs['Lambda'],  shape [B, T] float32
      labels: labels,             shape [B, T] float32
      reduction: 'none' | 'mean' | 'sum'
      block_bytes: target bytes per input array per pipeline block (static).
    """
    if reduction not in ("none", "mean", "sum"):
        raise ValueError(
            f"`reduction` = {reduction} is not valid. Use 'none', 'mean' or 'sum'."
        )

    B, T = lam.shape
    tb, fold = _choose_row_tile(B, T, block_bytes)
    nb = -(-B // tb)                      # cdiv
    need_mask = (nb * tb != B)

    row_spec = pl.BlockSpec((tb, T), lambda i: (i, 0))
    compiler_params = pltpu.CompilerParams(
        dimension_semantics=("parallel",),
        vmem_limit_bytes=_VMEM_LIMIT_BYTES,
    )

    if reduction == "none":
        return pl.pallas_call(
            _survode_elem_kernel,
            out_shape=jax.ShapeDtypeStruct((B, T), jnp.float32),
            grid_spec=pltpu.PrefetchScalarGridSpec(
                num_scalar_prefetch=0,
                grid=(nb,),
                in_specs=[row_spec, row_spec, row_spec],
                out_specs=row_spec,
            ),
            compiler_params=compiler_params,
            cost_estimate=pl.CostEstimate(
                flops=4 * B * T,
                transcendentals=B * T,
                bytes_accessed=4 * B * T * 4,
            ),
        )(lam, Lam, labels)

    # 'mean' / 'sum': stage 1 -> lane-dense per-block partial sums (parallel grid),
    # stage 2 -> trivial jnp.sum of the tiny partial array in plain JAX.
    if fold:
        out_rows, out_block = 8 * nb, (8, T)
        out_map = lambda i: (i, 0)
    else:
        out_rows, out_block = 1, (1, T)
        out_map = lambda i: (0, 0)

    partial = pl.pallas_call(
        _make_partial_kernel(tb, B, fold, need_mask),
        out_shape=jax.ShapeDtypeStruct((out_rows, T), jnp.float32),
        grid_spec=pltpu.PrefetchScalarGridSpec(
            num_scalar_prefetch=0,
            grid=(nb,),
            in_specs=[row_spec, row_spec, row_spec],
            out_specs=pl.BlockSpec(out_block, out_map),
        ),
        compiler_params=compiler_params,
        cost_estimate=pl.CostEstimate(
            flops=5 * B * T,
            transcendentals=B * T,
            bytes_accessed=3 * B * T * 4 + out_rows * T * 4,
        ),
    )(lam, Lam, labels)

    total = jnp.sum(partial)
    if reduction == "sum":
        return total
    return total / jnp.float32(B * T)


# Pure-JAX reference for verification.
def survode_loss_ref(lam, Lam, labels, reduction="mean"):
    loss = -labels * jnp.log(jnp.maximum(lam, _CLAMP_MIN)) + Lam
    if reduction == "none":
        return loss
    if reduction == "sum":
        return jnp.sum(loss)
    return jnp.mean(loss)


# ---------------------------------------------------------------------------
# Main
# ---------------------------------------------------------------------------
if __name__ == "__main__":
    key = jax.random.PRNGKey(0)

    def make_inputs(k, B, T):
        k1, k2, k3 = jax.random.split(k, 3)
        lam = jax.nn.softplus(jax.random.normal(k1, (B, T), dtype=jnp.float32))
        Lam = jax.nn.softplus(jax.random.normal(k2, (B, T), dtype=jnp.float32))
        labels = (jax.random.uniform(k3, (B, T)) > 0.5).astype(jnp.float32)
        return lam, Lam, labels

    # (shape, block_bytes): cover single-block, multi-block + tail masking, and B < 8.
    cases = [
        ((8, 128), _DEFAULT_BLOCK_BYTES),   # lane-aligned, single block
        ((64, 256), _DEFAULT_BLOCK_BYTES),  # single larger block, fold path
        ((13, 96), 4096),                   # tiny blocks -> grid of 2 + tail-row masking
        ((6, 128), _DEFAULT_BLOCK_BYTES),   # B < 8 -> full-dim block, no fold
    ]

    for (B, T), blk in cases:
        lam, Lam, labels = make_inputs(jax.random.fold_in(key, B * 1000 + T), B, T)
        for red in ("none", "sum", "mean"):
            out = survode_loss(lam, Lam, labels, reduction=red, block_bytes=blk)
            out = jax.block_until_ready(out)
            ref = survode_loss_ref(lam, Lam, labels, reduction=red)
            assert jnp.allclose(out, ref, rtol=1e-5, atol=1e-5), (B, T, red)

    print("KERNEL_OK")
</pallas_src>

<mosaic_0001>
module attributes {stable_mosaic.version = 11 : i64} {
  func.func @_survode_elem_kernel(%arg0: i32, %arg1: memref<8x128xf32, #tpu.memory_space<vmem>>, %arg2: memref<8x128xf32, #tpu.memory_space<vmem>>, %arg3: memref<8x128xf32, #tpu.memory_space<vmem>>, %arg4: memref<8x128xf32, #tpu.memory_space<vmem>>) attributes {dimension_semantics = [#tpu.dimension_semantics<parallel>], iteration_bounds = array<i64: 1>, scalar_prefetch = 0 : i64, scratch_operands = 0 : i64, tpu.core_type = #tpu.core_type<tc>, window_params = [{transform_indices = @transform_0, window_bounds = array<i64: 8, 128>}, {transform_indices = @transform_1, window_bounds = array<i64: 8, 128>}, {transform_indices = @transform_2, window_bounds = array<i64: 8, 128>}, {transform_indices = @transform_3, window_bounds = array<i64: 8, 128>}]} {
    %c0 = arith.constant 0 : index
    %c0_0 = arith.constant 0 : index
    %0 = vector.load %arg1[%c0, %c0_0] : memref<8x128xf32, #tpu.memory_space<vmem>>, vector<8x128xf32>
    %cst = arith.constant 9.99999993E-9 : f32
    %1 = vector.broadcast %cst : f32 to vector<8x128xf32>
    %2 = arith.maximumf %0, %1 : vector<8x128xf32>
    %c0_1 = arith.constant 0 : index
    %c0_2 = arith.constant 0 : index
    %3 = vector.load %arg3[%c0_1, %c0_2] : memref<8x128xf32, #tpu.memory_space<vmem>>, vector<8x128xf32>
    %c0_3 = arith.constant 0 : index
    %c0_4 = arith.constant 0 : index
    %4 = vector.load %arg2[%c0_3, %c0_4] : memref<8x128xf32, #tpu.memory_space<vmem>>, vector<8x128xf32>
    %cst_5 = arith.constant 0.000000e+00 : f32
    %5 = vector.broadcast %cst_5 : f32 to vector<8x128xf32>
    %6 = arith.subf %5, %3 : vector<8x128xf32>
    %7 = math.log %2 : vector<8x128xf32>
    %8 = arith.mulf %6, %7 : vector<8x128xf32>
    %9 = arith.addf %8, %4 : vector<8x128xf32>
    %c0_6 = arith.constant 0 : index
    %c0_7 = arith.constant 0 : index
    %10 = vector.load %arg4[%c0_6, %c0_7] : memref<8x128xf32, #tpu.memory_space<vmem>>, vector<8x128xf32>
    tpu.vector_store %arg4[%c0_6, %c0_7], %9 {strides = array<i32>} : memref<8x128xf32, #tpu.memory_space<vmem>>, vector<8x128xf32>,
    return
  }
  func.func @transform_0(%arg0: i32) -> (i32, i32) {
    %c0_i32 = arith.constant 0 : i32
    %c0_i32_0 = arith.constant 0 : i32
    return %arg0, %c0_i32 : i32, i32
  }
  func.func @transform_1(%arg0: i32) -> (i32, i32) {
    %c0_i32 = arith.constant 0 : i32
    %c0_i32_0 = arith.constant 0 : i32
    return %arg0, %c0_i32 : i32, i32
  }
  func.func @transform_2(%arg0: i32) -> (i32, i32) {
    %c0_i32 = arith.constant 0 : i32
    %c0_i32_0 = arith.constant 0 : i32
    return %arg0, %c0_i32 : i32, i32
  }
  func.func @transform_3(%arg0: i32) -> (i32, i32) {
    %c0_i32 = arith.constant 0 : i32
    %c0_i32_0 = arith.constant 0 : i32
    return %arg0, %c0_i32 : i32, i32
  }
}

</mosaic_0001>

<bundles_post_ra>
// kernel: survode_loss.1
= control target key start
LH: loop header
LB: loop body
LE: loop exit
PB: predicated region body
PF: predicated region fallthrough
CT: control target
= control target key end

     0   :  { %8 = vsyncpa [#allocation3], 0  ;;  %s248_s0 = inlined_call_operand.hbm [shape: f32[8,128], index: 0, kind: input, shape index: {}]   ;;  %s249_s1 = inlined_call_operand.hbm [shape: f32[8,128], index: 1, kind: input, shape index: {}]   ;;  %s250_s2 = inlined_call_operand.hbm [shape: f32[8,128], index: 2, kind: input, shape index: {}]   ;;  %s251_s3 = inlined_call_operand.hbm [shape: f32[8,128], index: 3, kind: output, shape index: {}]  }
   0x1   :  { %9 = vsyncpa [#allocation6], 0 }
   0x2   :  { %10 = vsyncpa [#allocation4], 0  ;;  %s176_s12 = smov [#allocation5]   ;;  %s177_s14 = smov [#allocation2]  }
   0x3   :  { %s27_s13 = sshll.u32 %s176_s12, 4  ;;  %s17_s15 = sshll.u32 %s177_s14, 4  ;;  %s28_s13 = int_to_ptr.vmem [resolvable:$true] %s27_s13  ;;  %s18_s15 = int_to_ptr.vmem [resolvable:$true] %s17_s15 }
   0x4   :  { %s82_s18 = scalar_lea.hbm %s249_s1, 128 }
   0x5   :  { %p83_p0 = scmp.ne.s32.totalorder %s249_s1, %s82_s18  ;;  %p86_p1 = scmp.lt.u32.totalorder %s82_s18, %s249_s1 }
   0x7   :  { %p88_p2 = pnand %p86_p1, %p83_p0 }
   0x9   :  { %91 = shalt.err (!%p88_p2)
}
   0xa   :  { %s92_s23 = scalar_lea.vmem %s28_s13, 128  ;;  %p97_p4 = scmp.lt.s32.totalorder %s28_s13, %s28_s13 }
   0xb   :  { %p93_p3 = scmp.ne.s32.totalorder %s28_s13, %s92_s23  ;;  %p98_p5 = scmp.lt.s32.totalorder %s92_s23, %s92_s23 }
   0xd   :  { %p99_p6 = por %p98_p5, %p97_p4 }
   0xf   :  { %p100_p7 = pnand %p99_p6, %p93_p3 }
  0x11   :  { %103 = shalt.err (!%p100_p7)
}
  0x12   :  { %30 = dma.hbm_to_vmem [thread:$0]  %s249_s1, 128, %s28_s13, [#allocation6]  }
  0x13   :  { %s104_s28 = scalar_lea.hbm %s248_s0, 128 }
  0x14   :  { %p105_p8 = scmp.ne.s32.totalorder %s248_s0, %s104_s28  ;;  %p108_p9 = scmp.lt.u32.totalorder %s104_s28, %s248_s0 }
  0x16   :  { %p110_p10 = pnand %p108_p9, %p105_p8 }
  0x18   :  { %113 = shalt.err (!%p110_p10)
}
  0x19   :  { %s114_s6 = scalar_lea.vmem %s18_s15, 128  ;;  %p119_p12 = scmp.lt.s32.totalorder %s18_s15, %s18_s15 }
  0x1a   :  { %p115_p11 = scmp.ne.s32.totalorder %s18_s15, %s114_s6  ;;  %p120_p13 = scmp.lt.s32.totalorder %s114_s6, %s114_s6 }
  0x1c   :  { %p121_p0 = por %p120_p13, %p119_p12 }
  0x1e   :  { %p122_p1 = pnand %p121_p0, %p115_p11 }
  0x20   :  { %125 = shalt.err (!%p122_p1)
}
  0x21   :  { %20 = dma.hbm_to_vmem [thread:$0]  %s248_s0, 128, %s18_s15, [#allocation3]  }
  0x22   :  { %s178_s8 = smov [#allocation7]   ;;  %s126_s12 = scalar_lea.hbm %s250_s2, 128 }
  0x23   :  { %s37_s9 = sshll.u32 %s178_s8, 4  ;;  %p127_p2 = scmp.ne.s32.totalorder %s250_s2, %s126_s12  ;;  %s38_s9 = int_to_ptr.vmem [resolvable:$true] %s37_s9 }
  0x24   :  { %p130_p3 = scmp.lt.u32.totalorder %s126_s12, %s250_s2 }
  0x26   :  { %p132_p4 = pnand %p130_p3, %p127_p2 }
  0x28   :  { %135 = shalt.err (!%p132_p4)
}
  0x29   :  { %s136_s18 = scalar_lea.vmem %s38_s9, 128  ;;  %p141_p6 = scmp.lt.s32.totalorder %s38_s9, %s38_s9 }
  0x2a   :  { %p137_p5 = scmp.ne.s32.totalorder %s38_s9, %s136_s18  ;;  %p142_p7 = scmp.lt.s32.totalorder %s136_s18, %s136_s18 }
  0x2c   :  { %p143_p8 = por %p142_p7, %p141_p6 }
  0x2e   :  { %p144_p9 = pnand %p143_p8, %p137_p5 }
  0x30   :  { %147 = shalt.err (!%p144_p9)
}
  0x31   :  { %40 = dma.hbm_to_vmem [thread:$0]  %s250_s2, 128, %s38_s9, [#allocation6]  }
  0x32   :  { %170 = dma.done.wait [#allocation3], 128  }
  0x33   :  { %171 = vsyncadd [#allocation3], 4294967168 }
  0x34   :  { %172 = dma.done.wait [#allocation6], 256  }
  0x35   :  { %173 = vsyncadd [#allocation6], 4294967040  ;;  %v50_v0 = vld [vmem:[#allocation2] sm:$0xff]  ;;  %v52_v2 = vld [vmem:[#allocation7] sm:$0xff]  ;;  %s179_s19 = smov [#allocation8]  }
  0x36   :  { %v51_v1 = vmax.f32 %v50_v0, 1e-08  ;;  %v54_v3 = vsub.f32 0.0, %v52_v2  ;;  %v53_v6 = vld [vmem:[#allocation5] sm:$0xff]  ;;  %s66_s20 = sshll.u32 %s179_s19, 4  ;;  %s67_s20 = int_to_ptr.vmem [resolvable:$true] %s66_s20 }
  0x37   :  { %s148_s21 = scalar_lea.vmem %s67_s20, 128  ;;  %p153_p11 = scmp.lt.s32.totalorder %s67_s20, %s67_s20 }
  0x38   :  { %80 = vlog2.f32 %v51_v1  ;;  %p149_p10 = scmp.ne.s32.totalorder %s67_s20, %s148_s21  ;;  %p154_p12 = scmp.lt.s32.totalorder %s148_s21, %s148_s21 }
  0x3a   :  { %p155_p13 = por %p154_p12, %p153_p11 }
  0x3c   :  { %p156_p0 = pnand %p155_p13, %p149_p10 }
  0x42   :  { %v81_v4 = vpop.eup %80 }
  0x43   :  { %v56_v5 = vmul.f32 0.6931472, %v81_v4 }
  0x45   :  { %v57_v7 = vmul.f32 %v56_v5, %v54_v3 }
  0x47   :  { %v58_v8 = vadd.f32 %v57_v7, %v53_v6 }
  0x49   :  { %59 = vst [vmem:[#allocation8] sm:$0xff] %v58_v8 }
  0x4a   :  { %159 = shalt.err (!%p156_p0)
}
  0x4b   :  { %s160_s23 = scalar_lea.hbm %s251_s3, 128 }
  0x4c   :  { %p161_p1 = scmp.ne.s32.totalorder %s251_s3, %s160_s23  ;;  %p164_p2 = scmp.lt.u32.totalorder %s160_s23, %s251_s3 }
  0x4e   :  { %p166_p3 = pnand %p164_p2, %p161_p1 }
  0x50   :  { %169 = shalt.err (!%p166_p3)
}
  0x51   :  { %69 = dma.vmem_to_hbm [thread:$0]  %s67_s20, 128, %s251_s3, [#allocation4]  }
  0x52   :  { %174 = dma.done.wait [#allocation4], 128  }
  0x53   :  { %175 = vsyncadd [#allocation4], 4294967168 }
  0x54   :  { %73 = vsyncpa [#allocation3], 1 }
  0x55   :  { %74 = vsyncpa [#allocation6], 1 }
  0x56   :  { %75 = vsyncpa [#allocation4], 1 }

</bundles_post_ra>
